<compile_context>
chip_gen: v5e
topology: v5e:2x2
jax: 0.10.0
libtpu: 0.0.40
codegen_flags: <defaults>
</compile_context>

<pallas_src>
import functools

import jax
import jax.numpy as jnp
from jax.experimental import pallas as pl
from jax.experimental.pallas import tpu as pltpu

LN_EPS = 1e-5


# ---------------------------------------------------------------------------
# Small helpers
# ---------------------------------------------------------------------------
def _round_up(n, m):
    return ((n + m - 1) // m) * m


def _nbytes(*arrays):
    return sum(int(a.size) * a.dtype.itemsize for a in arrays)


def _layernorm(x, g, b):
    # LayerNorm with f32 statistics.
    x = x.astype(jnp.float32)
    mean = jnp.mean(x, axis=-1, keepdims=True)
    var = jnp.mean(jnp.square(x - mean), axis=-1, keepdims=True)
    return (x - mean) * jax.lax.rsqrt(var + LN_EPS) * g + b


@functools.lru_cache(maxsize=None)
def _physical_vmem_bytes():
    try:
        return max(int(pltpu.get_tpu_info().vmem_capacity_bytes), 32 << 20)
    except Exception:
        return 64 << 20        # conservative default: v7x per-TensorCore VMEM


@functools.lru_cache(maxsize=None)
def _use_bf16_exp():
    # bf16 EUP exp is ~2x f32 on v6e/v7x; v5e has no bf16 EUP (would only add
    # conversion cost), so keep f32 exp there.
    try:
        kind = jax.devices()[0].device_kind.lower()
    except Exception:
        return False
    return ("v6" in kind) or ("v7" in kind)


@functools.lru_cache(maxsize=None)
def _buffered_one_supported():
    # Constant-index weight blocks don't need double-buffering; Buffered(1)
    # halves their VMEM footprint (critical on v7x's 64 MiB).  Probe once with
    # a tiny kernel and fall back to default specs if this jax build rejects
    # pipeline_mode / Buffered(1).
    try:
        def k(x_ref, w_ref, o_ref):
            o_ref[...] = x_ref[...] + w_ref[...]

        f = pl.pallas_call(
            k,
            out_shape=jax.ShapeDtypeStruct((16, 128), jnp.float32),
            grid=(2,),
            in_specs=[pl.BlockSpec((8, 128), lambda i: (i, 0)),
                      pl.BlockSpec((8, 128), lambda i: (0, 0),
                                   pipeline_mode=pl.Buffered(1))],
            out_specs=pl.BlockSpec((8, 128), lambda i: (i, 0)),
        )
        x = jnp.arange(16 * 128, dtype=jnp.float32).reshape(16, 128)
        w = jnp.full((8, 128), 2.0, jnp.float32)
        out = jax.block_until_ready(f(x, w))
        return bool(jnp.allclose(out, x + jnp.tile(w, (2, 1))))
    except Exception:
        return False


def _const_spec(shape):
    # BlockSpec for a weight that is identical for every grid step.
    ndim = len(shape)
    idx = lambda *args: (0,) * ndim
    if _buffered_one_supported():
        return pl.BlockSpec(shape, idx, pipeline_mode=pl.Buffered(1))
    return pl.BlockSpec(shape, idx)


def _weight_buf_mult():
    return 1 if _buffered_one_supported() else 2


def _compiler_params(semantics, resident_bytes):
    # Scoped-VMEM limit sized from the actual footprint, clamped to the
    # device's physical VMEM (v7x: 64 MiB) with headroom; never below 32 MiB.
    cap = max(32 << 20, _physical_vmem_bytes() - (8 << 20))
    limit = int(resident_bytes * 1.25) + (4 << 20)
    limit = max(32 << 20, min(limit, cap))
    return pltpu.CompilerParams(dimension_semantics=semantics,
                                vmem_limit_bytes=limit)


# ---------------------------------------------------------------------------
# Embedding kernel: patches @ W  (+ class token + position embedding, fused)
#   - CLS handled as a zero "patch" row with cls folded into pos row 0.
#   - Padded rows (beyond the real sequence) are zero patches with zero pos.
# ---------------------------------------------------------------------------
def _embed_kernel(patch_ref, w_ref, pos_ref, o_ref):
    pe = jnp.dot(patch_ref[...], w_ref[...],
                 preferred_element_type=jnp.float32)        # (S_pad, D)
    o_ref[...] = (pe + pos_ref[...]).astype(o_ref.dtype)


def embed(patches, patch_w, pos_cls):
    # patches: [B, S_pad, K] bf16   patch_w: [K, D] bf16   pos_cls: [S_pad, D] f32
    B, S_pad, K = patches.shape
    D = patch_w.shape[1]
    resident = (_weight_buf_mult() * _nbytes(patch_w, pos_cls)
                + 2 * (S_pad * K * 2 + S_pad * D * 4) + S_pad * D * 4)
    return pl.pallas_call(
        _embed_kernel,
        out_shape=jax.ShapeDtypeStruct((B, S_pad, D), jnp.float32),
        grid=(B,),
        in_specs=[pl.BlockSpec((None, S_pad, K), lambda b: (b, 0, 0)),
                  _const_spec(patch_w.shape),
                  _const_spec(pos_cls.shape)],
        out_specs=pl.BlockSpec((None, S_pad, D), lambda b: (b, 0, 0)),
        compiler_params=_compiler_params(("parallel",), resident),
    )(patches, patch_w, pos_cls)


# ---------------------------------------------------------------------------
# Standalone pre-layernorm (only used when there are zero encoder layers)
# ---------------------------------------------------------------------------
def _ln_kernel(x_ref, g_ref, b_ref, o_ref):
    o_ref[...] = _layernorm(x_ref[...], g_ref[...], b_ref[...]).astype(o_ref.dtype)


def pre_layernorm(x, g, b):
    B, S, D = x.shape
    return pl.pallas_call(
        _ln_kernel,
        out_shape=jax.ShapeDtypeStruct((B, S, D), x.dtype),
        grid=(B,),
        in_specs=[pl.BlockSpec((None, S, D), lambda bb: (bb, 0, 0)),
                  _const_spec(g.shape),
                  _const_spec(b.shape)],
        out_specs=pl.BlockSpec((None, S, D), lambda bb: (bb, 0, 0)),
        compiler_params=_compiler_params(("parallel",), 4 * S * D * 4),
    )(x, g, b)


# ---------------------------------------------------------------------------
# Fused encoder layer:
#   [pre-LN (layer 0 only)] -> LN1 -> fused QKV -> MHA (padded keys masked)
#   -> out-proj -> +residual -> LN2 -> fc1 -> quick_gelu -> fc2 -> +residual
#   Grid over batch; whole (padded) sequence + all layer weights resident.
# ---------------------------------------------------------------------------
def _encoder_layer_kernel(x_ref, *refs, num_heads, head_size, scale,
                          seq_len, fuse_pre_ln, use_bf16_exp):
    if fuse_pre_ln:
        (pre_g, pre_b, ln1g, ln1b, wqkv, bqkv, wo, bo,
         ln2g, ln2b, w1, b1, w2, b2, o_ref) = refs
    else:
        (ln1g, ln1b, wqkv, bqkv, wo, bo,
         ln2g, ln2b, w1, b1, w2, b2, o_ref) = refs

    x = x_ref[...].astype(jnp.float32)                      # (S_pad, D)
    if fuse_pre_ln:
        x = _layernorm(x, pre_g[...], pre_b[...])           # residual is post pre-LN
    S, D = x.shape

    # ---- attention ----
    h = _layernorm(x, ln1g[...], ln1b[...]).astype(jnp.bfloat16)
    qkv = jnp.dot(h, wqkv[...], preferred_element_type=jnp.float32) + bqkv[...]
    q = (qkv[:, :D] * scale).astype(jnp.bfloat16)
    k = qkv[:, D:2 * D].astype(jnp.bfloat16)
    v = qkv[:, 2 * D:].astype(jnp.bfloat16)

    qh = q.reshape(S, num_heads, head_size)
    kh = k.reshape(S, num_heads, head_size)
    vh = v.reshape(S, num_heads, head_size)

    s = jnp.einsum("qhd,khd->hqk", qh, kh,
                   preferred_element_type=jnp.float32)      # (H, S, S)
    if S > seq_len:                                         # mask padded keys
        key_ids = jax.lax.broadcasted_iota(jnp.int32, (1, 1, S), 2)
        s = jnp.where(key_ids < seq_len, s, jnp.float32(-1e30))

    m = jnp.max(s, axis=-1, keepdims=True)
    z = s - m
    if use_bf16_exp:                                        # v6e / v7x only
        e = jnp.exp(z.astype(jnp.bfloat16)).astype(jnp.float32)
    else:
        e = jnp.exp(z)
    p = (e / jnp.sum(e, axis=-1, keepdims=True)).astype(jnp.bfloat16)

    ctx = jnp.einsum("hqk,khd->qhd", p, vh,
                     preferred_element_type=jnp.float32)    # (S, H, hs)
    ctx = ctx.reshape(S, D).astype(jnp.bfloat16)
    attn = jnp.dot(ctx, wo[...], preferred_element_type=jnp.float32) + bo[...]
    x = x + attn                                            # residual 1 (f32)

    # ---- MLP ----
    h2 = _layernorm(x, ln2g[...], ln2b[...]).astype(jnp.bfloat16)
    h1 = jnp.dot(h2, w1[...], preferred_element_type=jnp.float32) + b1[...]
    h1 = h1 * jax.nn.sigmoid(1.702 * h1)                    # quick_gelu
    mlp = jnp.dot(h1.astype(jnp.bfloat16), w2[...],
                  preferred_element_type=jnp.float32) + b2[...]
    o_ref[...] = (x + mlp).astype(o_ref.dtype)


def encoder_layer(x, lp, num_heads, head_size, seq_len, pre_ln=None,
                  use_bf16_exp=False):
    B, S_pad, D = x.shape
    inter = lp["w1"].shape[1]
    scale = float(head_size) ** -0.5
    fuse_pre_ln = pre_ln is not None
    kernel = functools.partial(
        _encoder_layer_kernel, num_heads=num_heads, head_size=head_size,
        scale=scale, seq_len=seq_len, fuse_pre_ln=fuse_pre_ln,
        use_bf16_exp=use_bf16_exp)

    weights = []
    if fuse_pre_ln:
        weights += [pre_ln[0], pre_ln[1]]
    weights += [lp["ln1_g"], lp["ln1_b"], lp["wqkv"], lp["bqkv"],
                lp["wo"], lp["bo"], lp["ln2_g"], lp["ln2_b"],
                lp["w1"], lp["b1"], lp["w2"], lp["b2"]]

    in_specs = [pl.BlockSpec((None, S_pad, D), lambda b: (b, 0, 0))]
    in_specs += [_const_spec(w.shape) for w in weights]

    # Resident estimate including the big intermediates (qkv, scores, MLP hidden).
    acts = (6 * S_pad * D * 4 + S_pad * 3 * D * 4
            + 3 * num_heads * S_pad * S_pad * 4 + 2 * S_pad * inter * 4)
    resident = (_weight_buf_mult() * _nbytes(*weights)
                + 4 * S_pad * D * 4 + acts)

    return pl.pallas_call(
        kernel,
        out_shape=jax.ShapeDtypeStruct((B, S_pad, D), x.dtype),
        grid=(B,),
        in_specs=in_specs,
        out_specs=pl.BlockSpec((None, S_pad, D), lambda b: (b, 0, 0)),
        compiler_params=_compiler_params(("parallel",), resident),
    )(x, *weights)


# ---------------------------------------------------------------------------
# Full CLIPVisionModel forward
# ---------------------------------------------------------------------------
def clip_vision_forward(pixel_values, params):
    B, C, Himg, Wimg = pixel_values.shape
    ps = params["patch_size"]
    nh, nw = Himg // ps, Wimg // ps
    Np = nh * nw
    D = params["class_embedding"].shape[-1]
    S_real = Np + 1
    # Pad sequence to a sublane multiple (dense, unmasked [B,S,D] stores).
    S_pad = _round_up(S_real, 8)

    # Extract non-overlapping patches; flatten in (c, kh, kw) order to match
    # the Conv2d weight layout [D, C, kh, kw].
    x = pixel_values.astype(jnp.float32)
    x = x.reshape(B, C, nh, ps, nw, ps)
    x = x.transpose(0, 2, 4, 1, 3, 5).reshape(B, Np, C * ps * ps)
    x = x.astype(jnp.bfloat16)   # torch: pixel_values.to(conv_weight.dtype)

    # Zero "patch" row 0 carries the CLS token (cls folded into pos row 0);
    # zero rows beyond S_real are padding (masked keys, sliced off at the end).
    K = C * ps * ps
    patches = jnp.zeros((B, S_pad, K), jnp.bfloat16).at[:, 1:S_real, :].set(x)
    pos_cls = jnp.zeros((S_pad, D), jnp.float32)
    pos_cls = pos_cls.at[:S_real].set(params["pos_embedding"].astype(jnp.float32))
    pos_cls = pos_cls.at[0].add(params["class_embedding"].astype(jnp.float32))

    h = embed(patches, params["patch_w"], pos_cls)          # [B, S_pad, D] f32

    layers = params["layers"]
    if not layers:
        h = pre_layernorm(h, params["pre_ln_g"], params["pre_ln_b"])
        return h[:, :S_real, :]

    use_bf16_exp = _use_bf16_exp()
    pre_ln = (params["pre_ln_g"], params["pre_ln_b"])
    for i, lp in enumerate(layers):
        # pre-layernorm is fused into layer 0's kernel.
        h = encoder_layer(h, lp, params["num_heads"], params["head_size"],
                          S_real, pre_ln=pre_ln if i == 0 else None,
                          use_bf16_exp=use_bf16_exp)
    return h[:, :S_real, :]                                 # last_hidden_state
    # TODO(synk): this file's CLIPVisionTransformer has no post_layernorm /
    # pooler, so last_hidden_state is the encoder output (matches reference).


# ---------------------------------------------------------------------------
# Deterministic parameter construction (synthetic weights)
# ---------------------------------------------------------------------------
def make_params(key, *, channels, patch_size, image_size, hidden, heads,
                intermediate, layers):
    num_positions = (image_size // patch_size) ** 2 + 1
    k = iter(jax.random.split(key, 8 + layers * 16))

    def nrm(shape, scl=0.02):
        return (scl * jax.random.normal(next(k), shape)).astype(jnp.float32)

    params = {
        "patch_size": patch_size,
        "num_heads": heads,
        "head_size": hidden // heads,
        # Conv2d weight [D, C, ps, ps] -> matmul weight [C*ps*ps, D], bf16
        "patch_w": nrm((hidden, channels, patch_size, patch_size))
                   .reshape(hidden, -1).T.astype(jnp.bfloat16),
        "class_embedding": nrm((hidden,)),
        "pos_embedding": nrm((num_positions, hidden)),
        "pre_ln_g": jnp.ones((1, hidden), jnp.float32),
        "pre_ln_b": jnp.zeros((1, hidden), jnp.float32),
        "layers": [],
    }
    for _ in range(layers):
        wq, bq = nrm((hidden, hidden)), nrm((1, hidden))
        wk, bk = nrm((hidden, hidden)), nrm((1, hidden))
        wv, bv = nrm((hidden, hidden)), nrm((1, hidden))
        lp = {
            "ln1_g": jnp.ones((1, hidden), jnp.float32),
            "ln1_b": jnp.zeros((1, hidden), jnp.float32),
            # fused QKV projection: [D, 3D] (torch [q;k;v].T), bf16 weights
            "wqkv": jnp.concatenate([wq, wk, wv], axis=1).astype(jnp.bfloat16),
            "bqkv": jnp.concatenate([bq, bk, bv], axis=1),
            "wo": nrm((hidden, hidden)).astype(jnp.bfloat16),
            "bo": nrm((1, hidden)),
            "ln2_g": jnp.ones((1, hidden), jnp.float32),
            "ln2_b": jnp.zeros((1, hidden), jnp.float32),
            "w1": nrm((hidden, intermediate)).astype(jnp.bfloat16),
            "b1": nrm((1, intermediate)),
            "w2": nrm((intermediate, hidden)).astype(jnp.bfloat16),
            "b2": nrm((1, hidden)),
        }
        params["layers"].append(lp)
    return params


if __name__ == "__main__":
    # Small CLIP-vision-like config
    B, C, IMG, PS = 2, 3, 16, 8
    HIDDEN, HEADS, INTER, LAYERS = 32, 4, 64, 2

    key = jax.random.PRNGKey(0)
    kp, kx = jax.random.split(key)
    params = make_params(kp, channels=C, patch_size=PS, image_size=IMG,
                         hidden=HIDDEN, heads=HEADS, intermediate=INTER,
                         layers=LAYERS)

    pixel_values = jax.random.normal(kx, (B, C, IMG, IMG), jnp.float32)

    out = clip_vision_forward(pixel_values, params)
    jax.block_until_ready(out)
    assert out.shape == (B, (IMG // PS) ** 2 + 1, HIDDEN)
    assert bool(jnp.all(jnp.isfinite(out)))
    print("KERNEL_OK")
</pallas_src>

<mosaic_0001>
module attributes {stable_mosaic.version = 11 : i64} {
  func.func @k(%arg0: i32, %arg1: memref<8x128xf32, #tpu.memory_space<vmem>>, %arg2: memref<8x128xf32, #tpu.memory_space<vmem>>, %arg3: memref<8x128xf32, #tpu.memory_space<vmem>>) attributes {dimension_semantics = [#tpu.dimension_semantics<arbitrary>], iteration_bounds = array<i64: 2>, scalar_prefetch = 0 : i64, scratch_operands = 0 : i64, tpu.core_type = #tpu.core_type<tc>, window_params = [{transform_indices = @transform_0, window_bounds = array<i64: 8, 128>}, {pipeline_mode = #tpu.pipeline_mode<synchronous>, transform_indices = @transform_1, window_bounds = array<i64: 8, 128>}, {transform_indices = @transform_2, window_bounds = array<i64: 8, 128>}]} {
    %c0 = arith.constant 0 : index
    %c0_0 = arith.constant 0 : index
    %0 = vector.load %arg1[%c0, %c0_0] : memref<8x128xf32, #tpu.memory_space<vmem>>, vector<8x128xf32>
    %c0_1 = arith.constant 0 : index
    %c0_2 = arith.constant 0 : index
    %1 = vector.load %arg2[%c0_1, %c0_2] : memref<8x128xf32, #tpu.memory_space<vmem>>, vector<8x128xf32>
    %2 = arith.addf %0, %1 : vector<8x128xf32>
    %c0_3 = arith.constant 0 : index
    %c0_4 = arith.constant 0 : index
    %3 = vector.load %arg3[%c0_3, %c0_4] : memref<8x128xf32, #tpu.memory_space<vmem>>, vector<8x128xf32>
    tpu.vector_store %arg3[%c0_3, %c0_4], %2 {strides = array<i32>} : memref<8x128xf32, #tpu.memory_space<vmem>>, vector<8x128xf32>,
    return
  }
  func.func @transform_0(%arg0: i32) -> (i32, i32) {
    %c0_i32 = arith.constant 0 : i32
    %c0_i32_0 = arith.constant 0 : i32
    return %arg0, %c0_i32 : i32, i32
  }
  func.func @transform_1(%arg0: i32) -> (i32, i32) {
    %c0_i32 = arith.constant 0 : i32
    %c0_i32_0 = arith.constant 0 : i32
    %c0_i32_1 = arith.constant 0 : i32
    return %c0_i32, %c0_i32_0 : i32, i32
  }
  func.func @transform_2(%arg0: i32) -> (i32, i32) {
    %c0_i32 = arith.constant 0 : i32
    %c0_i32_0 = arith.constant 0 : i32
    return %arg0, %c0_i32 : i32, i32
  }
}

module attributes {stable_mosaic.version = 11 : i64} {
  func.func @_embed_kernel(%arg0: i32, %arg1: memref<1x8x192xbf16, #tpu.memory_space<vmem>>, %arg2: memref<192x32xbf16, #tpu.memory_space<vmem>>, %arg3: memref<8x32xf32, #tpu.memory_space<vmem>>, %arg4: memref<1x8x32xf32, #tpu.memory_space<vmem>>) attributes {dimension_semantics = [#tpu.dimension_semantics<parallel>], iteration_bounds = array<i64: 2>, scalar_prefetch = 0 : i64, scratch_operands = 0 : i64, tpu.core_type = #tpu.core_type<tc>, window_params = [{transform_indices = @transform_0, window_bounds = array<i64: 1, 8, 192>}, {pipeline_mode = #tpu.pipeline_mode<synchronous>, transform_indices = @transform_1, window_bounds = array<i64: 192, 32>}, {pipeline_mode = #tpu.pipeline_mode<synchronous>, transform_indices = @transform_2, window_bounds = array<i64: 8, 32>}, {transform_indices = @transform_3, window_bounds = array<i64: 1, 8, 32>}]} {
    %c0 = arith.constant 0 : index
    %c0_0 = arith.constant 0 : index
    %c0_1 = arith.constant 0 : index
    %0 = vector.load %arg1[%c0, %c0_0, %c0_1] : memref<1x8x192xbf16, #tpu.memory_space<vmem>>, vector<1x8x192xbf16>
    %1 = vector.shape_cast %0 : vector<1x8x192xbf16> to vector<8x192xbf16>
    %c0_2 = arith.constant 0 : index
    %c0_3 = arith.constant 0 : index
    %2 = vector.load %arg2[%c0_2, %c0_3] : memref<192x32xbf16, #tpu.memory_space<vmem>>, vector<192x32xbf16>
    %cst = arith.constant dense<0.000000e+00> : vector<8x32xf32>
    %3 = tpu.matmul %1, %2, %cst {dimension_numbers = #tpu.dot_dimension_numbers<[1], [0], [0], [1], [0, 0, 1, 1], [], []>} : vector<8x192xbf16>, vector<192x32xbf16>, vector<8x32xf32> -> vector<8x32xf32>
    %c0_4 = arith.constant 0 : index
    %c0_5 = arith.constant 0 : index
    %4 = vector.load %arg3[%c0_4, %c0_5] : memref<8x32xf32, #tpu.memory_space<vmem>>, vector<8x32xf32>
    %5 = arith.addf %3, %4 : vector<8x32xf32>
    %c0_6 = arith.constant 0 : index
    %c0_7 = arith.constant 0 : index
    %c0_8 = arith.constant 0 : index
    %6 = vector.load %arg4[%c0_6, %c0_7, %c0_8] : memref<1x8x32xf32, #tpu.memory_space<vmem>>, vector<1x8x32xf32>
    %7 = vector.shape_cast %6 : vector<1x8x32xf32> to vector<8x32xf32>
    %8 = vector.shape_cast %5 : vector<8x32xf32> to vector<1x8x32xf32>
    tpu.vector_store %arg4[%c0_6, %c0_7, %c0_8], %8 {strides = array<i32>} : memref<1x8x32xf32, #tpu.memory_space<vmem>>, vector<1x8x32xf32>,
    return
  }
  func.func @transform_0(%arg0: i32) -> (i32, i32, i32) {
    %c0_i32 = arith.constant 0 : i32
    %c0_i32_0 = arith.constant 0 : i32
    %c0_i32_1 = arith.constant 0 : i32
    return %arg0, %c0_i32, %c0_i32_0 : i32, i32, i32
  }
  func.func @transform_1(%arg0: i32) -> (i32, i32) {
    %c0_i32 = arith.constant 0 : i32
    %c0_i32_0 = arith.constant 0 : i32
    %c0_i32_1 = arith.constant 0 : i32
    return %c0_i32, %c0_i32_0 : i32, i32
  }
  func.func @transform_2(%arg0: i32) -> (i32, i32) {
    %c0_i32 = arith.constant 0 : i32
    %c0_i32_0 = arith.constant 0 : i32
    %c0_i32_1 = arith.constant 0 : i32
    return %c0_i32, %c0_i32_0 : i32, i32
  }
  func.func @transform_3(%arg0: i32) -> (i32, i32, i32) {
    %c0_i32 = arith.constant 0 : i32
    %c0_i32_0 = arith.constant 0 : i32
    %c0_i32_1 = arith.constant 0 : i32
    return %arg0, %c0_i32, %c0_i32_0 : i32, i32, i32
  }
}

</mosaic_0001>

<bundles_post_ra>
// kernel: tpu_custom_call.1
= control target key start
LH: loop header
LB: loop body
LE: loop exit
PB: predicated region body
PF: predicated region fallthrough
CT: control target
= control target key end

     0   :  { %7 = vsyncpa [#allocation3], 0  ;;  %s633_s0 = inlined_call_operand.hbm [shape: f32[16,128], index: 0, kind: input, shape index: {}]   ;;  %s634_s1 = inlined_call_operand.hbm [shape: f32[8,128], index: 1, kind: input, shape index: {}]   ;;  %s635_s2 = inlined_call_operand.hbm [shape: f32[16,128], index: 2, kind: output, shape index: {}]  }
   0x1   :  { %9 = vsyncpa [#allocation3 + $0x1], 0 }
   0x2   :  { %10 = vsyncpa [#allocation6], 0 }
   0x3   :  { %11 = vsyncpa [#allocation4], 0 }
   0x4   :  { %13 = vsyncpa [#allocation4 + $0x1], 0  ;;  %s495_s9 = smov 0   ;;  %s497_s10 = smov 0  }
   0x5   :  { %s499_s11 = smov 0   ;;  %s501_s12 = smov 0  }
   0x6 LB: > { %s516_s13 = sadd.s32 4294967295, %s477_s12   ;;  %s276_s14 = sadd.s32 4294967294, %s477_s12   ;;  %s477_s12 = sphi %s501_s12, %s645_s12   ;;  %s473_s11 = sphi %s499_s11, %s644_s11   ;;  %s469_s10 = sphi %s497_s10, %s643_s10   ;;  %s465_s9 = sphi %s495_s9, %s642_s9  }
   0x7   : > { %p39_p0 = scmp.ne.s32.totalorder %s469_s10, %s465_s9  ;;  %p40_p1 = scmp.eq.s32.totalorder %s516_s13, 0 }
   0x8   : > { %p84_p2 = scmp.eq.s32.totalorder %s516_s13, 1  ;;  %p90_p3 = scmp.eq.s32.totalorder %s276_s14, 1 }
   0x9   : > { %p525_p4 = por %p40_p1, %p39_p0  ;;  %p277_p5 = scmp.ge.s32.totalorder %s477_s12, 1 }
   0xa   : > { %p530_p6 = por %p90_p3, %p39_p0  ;;  %p97_p7 = scmp.lt.s32.totalorder %s477_s12, 3 }
   0xb   : > { %s109_s19 = sshll.u32 %s634_s1, 4  ;;  %s479_s21 = smov [#allocation5]   ;;  %s110_s19 = int_to_ptr.hbm [resolvable:$true] %s109_s19 }
   0xc   : > { %p538_p8 = pnand %p277_p5, %p97_p7  ;;  %s111_s22 = sshll.u32 %s479_s21, 4  ;;  %s112_s22 = int_to_ptr.vmem [resolvable:$true] %s111_s22 }
   0xd   : > { %s548_s23 = sadd.s32 1, %s477_s12   ;;  %s26_s24 = sadd.s32 1, %s473_s11 }
   0xe   : > { %p298_p10 = pneg %p538_p8  ;;  %s23_s25 = ssub.s32 %s477_s12, %s548_s23 }
   0xf   : > { %p24_p12 = scmp.eq.s32.totalorder %s23_s25, 0  ;;  %p33_p13 = scmp.ne.s32.totalorder %s473_s11, %s469_s10 }
  0x10   : > { %p299_p11 = pnand %p298_p10, %p40_p1  ;;  %p34_p0 = scmp.eq.s32.totalorder %s477_s12, 0 }
  0x11   : > { %s557_s26 = scalar_select %p24_p12, %s473_s11, %s26_s24  }
  0x12   : > { %301 = dma.hbm_to_vmem [thread:$0]  (!%p299_p11), %s110_s19, 128, %s112_s22, [#allocation6]  }
  0x13   : > { %p561_p3 = por %p84_p2, %p33_p13  ;;  %p311_p5 = scmp.lt.s32.totalorder %s477_s12, 2 }
  0x14   : > { %s122_s28 = sand.u32 1, %s473_s11   ;;  %s281_s29 = sshll.u32 %s477_s12, 3 }
  0x15   : > { %p35_p7 = por %p34_p0, %p33_p13  ;;  %s280_s30 = sshll.u32 %s122_s28, 3 }
  0x16   : > { %s130_s5 = scalar_lea.hbm %s633_s0, %s281_s29  ;;  %s126_s7 = scalar_lea.vmem [#allocation2], %s280_s30 }
  0x17   : > { %s132_s6 = sshll.u32 %s130_s5, 4  ;;  %s134_s8 = sshll.u32 %s126_s7, 4  ;;  %s133_s6 = int_to_ptr.hbm [resolvable:$true] %s132_s6  ;;  %s135_s8 = int_to_ptr.vmem [resolvable:$true] %s134_s8 }
  0x18   : > { %p571_p10 = pnand %p311_p5, %p35_p7  ;;  %s123_s17 = scalar_lea.sflag [#allocation3], %s122_s28 }
  0x19   : > { %s377_s18 = sshra.s32 %s133_s6, 4  ;;  %s384_s24 = scalar_lea.hbm %s633_s0, 16  ;;  %s378_s18 = int_to_ptr.hbm [resolvable:$true] %s377_s18 }
  0x1a   : > { %s379_s19 = scalar_lea.hbm %s378_s18, 8  ;;  %p381_p11 = pneg %p571_p10 }
  0x1b   : > { %p380_p2 = scmp.ne.s32.totalorder %s378_s18, %s379_s19  ;;  %p385_p0 = scmp.lt.s32.totalorder %s378_s18, %s633_s0 }
  0x1c   : > { %p386_p5 = scmp.lt.s32.totalorder %s384_s24, %s379_s19 }
  0x1d   : > { %p382_p12 = pnand %p381_p11, %p380_p2 }
  0x1e   : > { %p387_p7 = por %p386_p5, %p385_p0 }
  0x1f   : > { %p383_p13 = pneg %p382_p12 }
  0x21   : > { %p388_p9 = pnand %p387_p7, %p383_p13 }
  0x23   : > { %391 = shalt.err (!%p388_p9)
}
  0x24   : > { %305 = dma.hbm_to_vmem [thread:$0]  (!%p571_p10), %s133_s6, 128, %s135_s8, %s123_s17  }
  0x25   : > { %143 = sbr.rel (%p538_p8) target bundleno = 60 (0x3c), region = 28  ;;  %s588_s28 = sand.u32 (!%p538_p8), 1, %s469_s10  }
  0x26   : > { %s283_s30 = sshll.u32 (!%p538_p8), %s588_s28, 3  ;;  %s146_s3 = scalar_lea.sflag (!%p538_p8), [#allocation3], %s588_s28 }
  0x27   : > { %s149_s4 = scalar_lea.vmem (!%p538_p8), [#allocation2], %s283_s30 }
  0x2a   : > { %452 = dma.done.wait (%p525_p4), %s146_s3, 128  }
  0x2b   : > { %454 = vsyncadd (%p525_p4), %s146_s3, 4294967168 }
  0x2c   : > { %456 = dma.done.wait (%p40_p1), [#allocation6], 128  }
  0x2d   : > { %458 = vsyncadd (%p40_p1), [#allocation6], 4294967168  ;;  %s287_s20 = sshll.u32 %s516_s13, 3  ;;  %s175_s8 = scalar_lea.vmem [#allocation7], %s283_s30  ;;  %v176_v0 = vld [vmem:[%s149_s4] sm:$0xff]  ;;  %v177_v1 = vld [vmem:[#allocation5] sm:$0xff] }
  0x2e   : > { %s191_s7 = scalar_lea.hbm %s635_s2, %s287_s20  ;;  %s193_s14 = sshll.u32 %s175_s8, 4  ;;  %v178_v2 = vadd.f32 %v177_v1, %v176_v0  ;;  %s194_s14 = int_to_ptr.vmem [resolvable:$true] %s193_s14 }
  0x2f   : > { %s195_s17 = sshll.u32 %s191_s7, 4  ;;  %s181_s15 = scalar_lea.sflag [#allocation4], %s588_s28  ;;  %s196_s17 = int_to_ptr.hbm [resolvable:$true] %s195_s17 }
  0x30   : > { %179 = vst [vmem:[%s175_s8] sm:$0xff] %v178_v2  ;;  %s421_s18 = sshra.s32 %s196_s17, 4  ;;  %s427_s22 = scalar_lea.hbm %s635_s2, 16  ;;  %s422_s18 = int_to_ptr.hbm [resolvable:$true] %s421_s18 }
  0x31   : > { %s423_s19 = scalar_lea.hbm %s422_s18, 8  ;;  %p428_p9 = scmp.lt.s32.totalorder %s422_s18, %s635_s2 }
  0x32   : > { %p424_p1 = scmp.ne.s32.totalorder %s422_s18, %s423_s19  ;;  %p429_p10 = scmp.lt.s32.totalorder %s427_s22, %s423_s19 }
  0x34   : > { %p425_p4 = pnand %p424_p1, %p561_p3  ;;  %p430_p2 = por %p429_p10, %p428_p9 }
  0x36   : > { %p426_p8 = pneg %p425_p4 }
  0x38   : > { %p431_p11 = pnand %p430_p2, %p426_p8 }
  0x3a   : > { %434 = shalt.err (!%p431_p11)
}
  0x3b   : > { %296 = dma.vmem_to_hbm [thread:$0]  (%p561_p3), %s194_s14, 128, %s196_s17, %s181_s15  }
  0x3c PF: > { %s207_s29 = sand.u32 1, %s465_s9   ;;  %p641_p12 = scmp.ge.s32.totalorder %s477_s12, 2 }
  0x3d   : > { %s208_s28 = scalar_lea.sflag [#allocation4], %s207_s29 }
  0x3e   : > { %p307_p13 = pnand %p641_p12, %p530_p6 }
  0x40   : > { %p308_p0 = pneg %p307_p13 }
  0x42   : > { %460 = dma.done.wait (%p308_p0), %s208_s28, 128  }
  0x43   : > { %462 = vsyncadd (%p308_p0), %s208_s28, 4294967168  ;;  %p16_p5 = scmp.ge.s32.totalorder %s548_s23, 4   ;;  %s642_s9 = smov %s469_s10 }
  0x44   : > { %s643_s10 = smov %s473_s11  ;;  %s644_s11 = smov %s557_s26 }
  0x45   : > { %s645_s12 = smov %s548_s23  ;;  %18 = sbr.rel (!%p16_p5) target bundleno = 6 (0x6), region = 77 }
  0x4a   :  { %214 = vsyncpa [#allocation3], 1 }
  0x4b   :  { %216 = vsyncpa [#allocation3 + $0x1], 1 }
  0x4c   :  { %217 = vsyncpa [#allocation6], 1 }
  0x4d   :  { %218 = vsyncpa [#allocation4], 1 }
  0x4e   :  { %220 = vsyncpa [#allocation4 + $0x1], 1 }

// kernel: tpu_custom_call.1
= control target key start
LH: loop header
LB: loop body
LE: loop exit
PB: predicated region body
PF: predicated region fallthrough
CT: control target
= control target key end

     0   :  { %8 = vsyncpa [#allocation3], 0  ;;  %s701_s0 = inlined_call_operand.vmem [shape: bf16[2,8,192], index: 0, kind: input, shape index: {}]   ;;  %s702_s1 = inlined_call_operand.vmem [shape: bf16[192,32], index: 1, kind: input, shape index: {}]   ;;  %s703_s2 = inlined_call_operand.vmem [shape: f32[8,32], index: 2, kind: input, shape index: {}]   ;;  %s704_s3 = inlined_call_operand.hbm [shape: f32[2,8,32], index: 3, kind: output, shape index: {}]  }
   0x1   :  { %10 = vsyncpa [#allocation3 + $0x1], 0  ;;  %s577_s12 = smov 0   ;;  %s579_s13 = smov 0  }
   0x2   :  { %s581_s14 = smov 0   ;;  %s583_s15 = smov 0  }
   0x3 LB: > { %s598_s16 = sadd.s32 4294967295, %s555_s15   ;;  %s381_s17 = sadd.s32 4294967294, %s555_s15   ;;  %s555_s15 = sphi %s583_s15, %s710_s15   ;;  %s551_s14 = sphi %s581_s14, %s709_s14   ;;  %s547_s13 = sphi %s579_s13, %s708_s13   ;;  %s543_s12 = sphi %s577_s12, %s707_s12  }
   0x4   : > { %s602_s18 = sadd.s32 1, %s555_s15   ;;  %s91_s19 = sadd.s32 1, %s551_s14 }
   0x5   : > { %s88_s20 = ssub.s32 %s555_s15, %s602_s18  ;;  %p101_p0 = scmp.ne.s32.totalorder %s551_s14, %s547_s13 }
   0x6   : > { %p89_p1 = scmp.eq.s32.totalorder %s88_s20, 0  ;;  %p102_p2 = scmp.eq.s32.totalorder %s598_s16, 1 }
   0x7   : > { %p107_p3 = scmp.ne.s32.totalorder %s547_s13, %s543_s12  ;;  %p108_p4 = scmp.eq.s32.totalorder %s381_s17, 1 }
   0x8   : > { %s613_s21 = scalar_select %p89_p1, %s551_s14, %s91_s19  }
   0x9   : > { %p615_p5 = por %p102_p2, %p101_p0  ;;  %p619_p6 = por %p108_p4, %p107_p3 }
   0xa   : > { %p384_p7 = scmp.ge.s32.totalorder %s555_s15, 1  ;;  %p140_p8 = scmp.lt.s32.totalorder %s555_s15, 3 }
   0xc   : > { %p141_p9 = pnand %p384_p7, %p140_p8 }
   0xd   : > { %p164_p10 = scmp.lt.s32.totalorder (!%p141_p9), %s598_s16, 1  ;;  %s161_s8 = sand.u32 (!%p141_p9), 1, %s547_s13  }
   0xe   : > { %144 = sbr.rel (%p141_p9) target bundleno = 185 (0xb9), region = 32  ;;  %s438_s10 = sshll.u32 (!%p141_p9), %s598_s16, 3 }
   0xf   : > { %s317_s19 = scalar_lea.hbm (!%p141_p9), %s704_s3, %s438_s10  ;;  %s513_s5 = scalar_lea.hbm (!%p141_p9), %s704_s3, 16 }
  0x10   : > { %s321_s27 = sshll.u32 (!%p141_p9), %s317_s19, 4  ;;  %s322_s27 = int_to_ptr.hbm [resolvable:$true] %s321_s27 }
  0x11   : > { %s507_s28 = sshra.s32 (!%p141_p9), %s322_s27, 4  ;;  %s508_s28 = int_to_ptr.hbm [resolvable:$true] %s507_s28 }
  0x12   : > { %s509_s29 = scalar_lea.hbm (!%p141_p9), %s508_s28, 8  ;;  %p514_p0 = scmp.lt.s32.totalorder (!%p141_p9), %s508_s28, %s704_s3 }
  0x13   : > { %v449_v0 = vld [vmem:[%s702_s1 + $0x38] sm:$0xff]  ;;  %v448_v2 = vld [vmem:[%s702_s1 + $0x30] sm:$0xff]  ;;  %s165_s30 = scalar_select %p164_p10, %s598_s16, 1  ;;  %v447_v4 = vld [vmem:[%s702_s1 + $0x28] sm:$0xff]  ;;  %vm274_vm0 = vcmask 523264   ;;  %vm304_vm1 = vcmask 261120  }
  0x14   : > { %v453_v1 = vld [vmem:[%s702_s1 + $0x58] sm:$0xff]  ;;  %278 = vmatpush.bf16.msra.mxu0 %v449_v0  ;;  %v452_v3 = vld [vmem:[%s702_s1 + $0x50] sm:$0xff]  ;;  %v451_v5 = vld [vmem:[%s702_s1 + $0x48] sm:$0xff]  ;;  %s307_s16 = scalar_lea.sflag [#allocation3], %s161_s8  ;;  %p510_p11 = scmp.ne.s32.totalorder %s508_s28, %s509_s29 }
  0x15   : > { %295 = vmatpush.bf16.msra.mxu1 %v453_v1  ;;  %s441_s6 = sshll.u32 %s165_s30, 3  ;;  %v446_v7 = vld [vmem:[%s702_s1 + $0x20] sm:$0xff]  ;;  %v445_v10 = vld [vmem:[%s702_s1 + $0x18] sm:$0xff]  ;;  %v444_v12 = vld [vmem:[%s702_s1 + $0x10] sm:$0xff]  ;;  %p515_p1 = scmp.lt.s32.totalorder %s513_s5, %s509_s29 }
  0x16   : > { %s168_s9 = scalar_lea.vmem %s701_s0, %s441_s6  ;;  %v450_v9 = vld [vmem:[%s702_s1 + $0x40] sm:$0xff]  ;;  %v443_v13 = vld [vmem:[%s702_s1 + $0x8] sm:$0xff]  ;;  %p511_p12 = pnand %p510_p11, %p615_p5 }
  0x17   : > { %v170_v6 = vld [vmem:[%s168_s9] sm:$0xff]  ;;  %s385_s9 = sshll.u32 %s161_s8, 3  ;;  %p516_p2 = por %p515_p1, %p514_p0 }
  0x18   : > { %279 = vmatpush.bf16.msra.mxu0 %v448_v2  ;;  %v198_v8 = vunpack.c.h.b16 %v170_v6  ;;  %v197_v14 = vunpack.c.l.b16 %v170_v6  ;;  %v442_v15 = vld [vmem:[%s702_s1] sm:$0xff]  ;;  %s163_s25 = scalar_lea.vmem [#allocation2], %s385_s9  ;;  %p512_p13 = pneg %p511_p12 }
  0x19   : > { %296 = vmatpush.bf16.msra.mxu1 %v452_v3  ;;  %v195_v19 = vld [vmem:[%s703_s2] sm:$0xff]  ;;  %s319_s26 = sshll.u32 %s163_s25, 4  ;;  %s320_s26 = int_to_ptr.vmem [resolvable:$true] %s319_s26 }
  0x1a   : > { %v200_v11 = vpack.c.b16 %v198_v8, %v198_v8  ;;  %v199_v16 = vpack.c.b16 %v197_v14, %v197_v14  ;;  %p517_p3 = pnand %p516_p2, %p512_p13 }
  0x1c   : > { %280 = vmatpush.bf16.msra.mxu0 %v447_v4 }
  0x1d   : > { %297 = vmatpush.bf16.msra.mxu1 %v451_v5 }
  0x20   : > { %281 = vmatpush.bf16.msra.mxu0 %v446_v7 }
  0x21   : > { %298 = vmatpush.bf16.msra.mxu1 %v450_v9 }
  0x24   : > { %282 = vmatpush.bf16.msra.mxu0 %v445_v10  ;;  %436 = vmatmul.msk.bf16.vlgmr.msra.gmra.mxu1 %vm274_vm0, %v200_v11 }
  0x28   : > { %283 = vmatpush.bf16.msra.mxu0 %v444_v12 }
  0x2c   : > { %284 = vmatpush.bf16.msra.mxu0 %v443_v13 }
  0x30   : > { %285 = vmatpush.bf16.msra.mxu0 %v442_v15 }
  0x33   : > { %286 = vmatmul.bf16.vlgmr.msra.gmra.mxu0 %v199_v16 }
  0xa1   : > { %v300_v17 = vpop.f32.mrf.mxu1 }
  0xa9   : > { %v302_v18 = vpop.f32.mrf.mxu1 }
  0xb0   : > { %v287_v20 = vpop.f32.mrf.mxu0 }
  0xb1   : > { %v288_v21 = vadd.f32 %v287_v20, %v195_v19 }
  0xb3   : > { %v301_v22 = vadd.f32 %v300_v17, %v288_v21 }
  0xb5   : > { %305 = vst.msk [vmem:[%s163_s25] sm:$0xff] %vm304_vm1, %v301_v22 }
  0xb6   : > { %520 = shalt.err (!%p517_p3)
}
  0xb7   : > { %454 = dma.vmem_to_hbm [thread:$0]  (%p615_p5), %s320_s26, 128, %s322_s27, %s307_s16  }
  0xb8   : > { %v289_v23 = vpop.f32.mrf.mxu0 }
  0xb9 PF: > { %p460_p4 = scmp.ge.s32.totalorder %s555_s15, 2  ;;  %s333_s8 = sand.u32 1, %s543_s12  }
  0xba   : > { %s334_s9 = scalar_lea.sflag [#allocation3], %s333_s8 }
  0xbb   : > { %p457_p7 = pnand %p460_p4, %p619_p6 }
  0xbd   : > { %p458_p8 = pneg %p457_p7 }
  0xbf   : > { %538 = dma.done.wait (%p458_p8), %s334_s9, 128  }
  0xc0   : > { %540 = vsyncadd (%p458_p8), %s334_s9, 4294967168  ;;  %p13_p9 = scmp.ge.s32.totalorder %s602_s18, 4   ;;  %s707_s12 = smov %s547_s13 }
  0xc1   : > { %s708_s13 = smov %s551_s14  ;;  %s709_s14 = smov %s613_s21 }
  0xc2   : > { %s710_s15 = smov %s602_s18  ;;  %15 = sbr.rel (!%p13_p9) target bundleno = 3 (0x3), region = 67 }
  0xc7   :  { %340 = vsyncpa [#allocation3], 1 }
  0xc8   :  { %342 = vsyncpa [#allocation3 + $0x1], 1 }

</bundles_post_ra>
